<compile_context>
chip_gen: v5e
topology: v5e:2x2
jax: 0.10.0
libtpu: 0.0.40
codegen_flags: <defaults>
</compile_context>

<pallas_src>
import math

import jax
import jax.numpy as jnp
from jax.experimental import pallas as pl
from jax.experimental.pallas import tpu as pltpu


# ----------------------------------------------------------------------------
# Kernel bodies
# ----------------------------------------------------------------------------

def _kv_proj_kernel(k_ref, v_ref, w_ref, b_ref, kp_ref, vp_ref):
    """One (seq-tile, D) slab of the K and V projections: y = x @ W + b."""
    kp = jnp.dot(k_ref[0], w_ref[0], preferred_element_type=jnp.float32) + b_ref[0]
    vp = jnp.dot(v_ref[0], w_ref[1], preferred_element_type=jnp.float32) + b_ref[1]
    kp_ref[0] = kp.astype(kp_ref.dtype)
    vp_ref[0] = vp.astype(vp_ref.dtype)


def _make_attention_kernel(num_heads, d_k, compute_dtype, return_attn):
    approx_recip = compute_dtype != jnp.float32

    def kernel(q_ref, k_ref, v_ref, wq_ref, bq_ref, wo_ref, bo_ref,
               out_ref, *maybe_attn_ref):
        cd = compute_dtype
        H = num_heads

        # Q projection for this query tile (scale already folded into Wq/bq).
        # K/V arrive pre-projected in the compute dtype.
        q = q_ref[0]                                           # (TQ, D)
        Q = (jnp.dot(q, wq_ref[...], preferred_element_type=jnp.float32)
             + bq_ref[...]).astype(cd)
        K = k_ref[0]                                           # (S_kv, D)
        V = v_ref[0]                                           # (S_kv, D)

        tq = Q.shape[0]
        s_kv = K.shape[0]

        # Head split: (S, D) -> (H, S, d_k), one relayout per tensor per tile.
        Qh = jnp.transpose(Q.reshape(tq, H, d_k), (1, 0, 2))
        Kh = jnp.transpose(K.reshape(s_kv, H, d_k), (1, 0, 2))
        Vh = jnp.transpose(V.reshape(s_kv, H, d_k), (1, 0, 2))

        # Head-batched scores on the MXU with f32 accumulation: (H, TQ, S_kv).
        scores = jnp.einsum("hqd,hkd->hqk", Qh, Kh,
                            preferred_element_type=jnp.float32)

        # Numerically stable softmax in f32; normalization on the EUP.
        m = jnp.max(scores, axis=-1, keepdims=True)
        e = jnp.exp(scores - m)
        denom = jnp.sum(e, axis=-1, keepdims=True)
        p = e * pl.reciprocal(denom, approx=approx_recip)

        if return_attn:
            maybe_attn_ref[0][0] = p.astype(maybe_attn_ref[0].dtype)

        # Head-batched context (dropout is identity in eval mode).
        ctx = jnp.einsum("hqk,hkd->hqd", p.astype(cd), Vh,
                         preferred_element_type=jnp.float32)

        # Merge heads, then a full-depth (TQ,D)x(D,D) output projection.
        ctx = jnp.transpose(ctx, (1, 0, 2)).reshape(tq, H * d_k).astype(cd)
        out = jnp.dot(ctx, wo_ref[...],
                      preferred_element_type=jnp.float32) + bo_ref[...]
        out_ref[0] = out.astype(out_ref.dtype)

    return kernel


# ----------------------------------------------------------------------------
# VMEM-aware tiling helpers
# ----------------------------------------------------------------------------

_CANDIDATE_TILES = (1024, 512, 256, 128, 64, 32, 16, 8)


def _vmem_budget_bytes():
    """~75% of physical VMEM on this generation (64 MiB fallback = v7x-safe)."""
    try:
        cap = int(pltpu.get_tpu_info().vmem_capacity_bytes)
    except Exception:
        cap = 64 * 1024 * 1024
    return cap * 3 // 4


def _attn_vmem_bytes(block_q, s_kv, D, H, cd_bytes, attn_bytes, single_buffer):
    """Rough resident-bytes estimate for one attention grid step."""
    buf = 1 if single_buffer else 2
    io = 2 * block_q * D * (cd_bytes + 4)                 # q in + f32 out blocks
    kv = buf * 2 * s_kv * D * cd_bytes                    # projected K and V
    weights = buf * (2 * D * D * cd_bytes + 2 * D * 4)
    attn_out = 2 * H * block_q * s_kv * attn_bytes        # double-buffered store
    tmp = ((block_q + 2 * s_kv) * D * cd_bytes            # head-split copies
           + 3 * H * block_q * s_kv * 4                   # scores / e / p (f32)
           + 2 * block_q * D * 4)                         # Q / ctx f32
    return io + kv + weights + attn_out + tmp


def _pick_block_q(s_q, s_kv, D, H, cd_bytes, attn_bytes, single_buffer, budget):
    for cand in _CANDIDATE_TILES:
        if cand <= s_q and s_q % cand == 0 and _attn_vmem_bytes(
                cand, s_kv, D, H, cd_bytes, attn_bytes, single_buffer) <= budget:
            return cand
    for cand in reversed(_CANDIDATE_TILES):
        if cand <= s_q and s_q % cand == 0:
            return cand
    return s_q


def _pick_proj_tile(s_kv, D, cd_bytes, budget):
    for cand in _CANDIDATE_TILES:
        if cand <= s_kv and s_kv % cand == 0:
            need = (8 * cand * D * cd_bytes          # 2 in + 2 out, 2-buffered
                    + 2 * 2 * D * D * cd_bytes       # stacked Wk/Wv
                    + 2 * cand * D * 4)              # f32 temporaries
            if need <= budget:
                return cand
    for cand in reversed(_CANDIDATE_TILES):
        if cand <= s_kv and s_kv % cand == 0:
            return cand
    return s_kv


def _const_spec(shape, index_map, single_buffer):
    """BlockSpec for blocks whose index map is (mostly) constant over the grid."""
    if single_buffer:
        return pl.BlockSpec(shape, index_map, pipeline_mode=pl.Buffered(1))
    return pl.BlockSpec(shape, index_map)


# ----------------------------------------------------------------------------
# pallas_call wrappers
# ----------------------------------------------------------------------------

def _project_kv(k, v, w_kv, b_kv, compute_dtype, single_buffer, vmem_limit):
    B, s_kv, D = k.shape
    cd_bytes = jnp.dtype(compute_dtype).itemsize
    ts = _pick_proj_tile(s_kv, D, cd_bytes, vmem_limit)

    cost = pl.CostEstimate(
        flops=int(4 * B * s_kv * D * D),
        transcendentals=0,
        bytes_accessed=int(4 * B * s_kv * D * cd_bytes
                           + 2 * D * D * cd_bytes + 8 * D),
    )
    kv_spec = pl.BlockSpec((1, ts, D), lambda b, i: (b, i, 0))

    return pl.pallas_call(
        _kv_proj_kernel,
        out_shape=(jax.ShapeDtypeStruct((B, s_kv, D), compute_dtype),
                   jax.ShapeDtypeStruct((B, s_kv, D), compute_dtype)),
        grid_spec=pltpu.PrefetchScalarGridSpec(
            num_scalar_prefetch=0,
            grid=(B, s_kv // ts),
            in_specs=[kv_spec, kv_spec,
                      _const_spec((2, D, D), lambda b, i: (0, 0, 0), single_buffer),
                      _const_spec((2, 1, D), lambda b, i: (0, 0, 0), single_buffer)],
            out_specs=[kv_spec, kv_spec],
        ),
        compiler_params=pltpu.CompilerParams(
            dimension_semantics=("parallel", "parallel"),
            vmem_limit_bytes=int(vmem_limit)),
        cost_estimate=cost,
    )(k, v, w_kv, b_kv)


def _attention_call(q, kp, vp, w_q, b_q, w_o, b_o, *, num_heads, d_k,
                    compute_dtype, block_q, return_attn, attn_dtype,
                    single_buffer, vmem_limit):
    B, s_q, D = q.shape
    s_kv = kp.shape[1]
    H = num_heads
    cd_bytes = jnp.dtype(compute_dtype).itemsize
    attn_bytes = jnp.dtype(attn_dtype).itemsize if return_attn else 0

    cost = pl.CostEstimate(
        flops=int(2 * B * (2 * s_q * D * D + 2 * s_q * s_kv * D)),
        transcendentals=int(B * H * s_q * s_kv),
        bytes_accessed=int(B * (s_q * D * (cd_bytes + 4) + 2 * s_kv * D * cd_bytes)
                           + 2 * D * D * cd_bytes + 8 * D
                           + B * H * s_q * s_kv * attn_bytes),
    )

    q_spec = pl.BlockSpec((1, block_q, D), lambda b, i: (b, i, 0))
    kv_spec = _const_spec((1, s_kv, D), lambda b, i: (b, 0, 0), single_buffer)
    in_specs = [q_spec, kv_spec, kv_spec,
                _const_spec((D, D), lambda b, i: (0, 0), single_buffer),
                _const_spec((1, D), lambda b, i: (0, 0), single_buffer),
                _const_spec((D, D), lambda b, i: (0, 0), single_buffer),
                _const_spec((1, D), lambda b, i: (0, 0), single_buffer)]

    out_shape = [jax.ShapeDtypeStruct((B, s_q, D), jnp.float32)]
    out_specs = [pl.BlockSpec((1, block_q, D), lambda b, i: (b, i, 0))]
    if return_attn:
        out_shape.append(jax.ShapeDtypeStruct((B, H, s_q, s_kv), attn_dtype))
        out_specs.append(
            pl.BlockSpec((1, H, block_q, s_kv), lambda b, i: (b, 0, i, 0)))

    results = pl.pallas_call(
        _make_attention_kernel(num_heads, d_k, compute_dtype, return_attn),
        out_shape=tuple(out_shape),
        grid_spec=pltpu.PrefetchScalarGridSpec(
            num_scalar_prefetch=0,
            grid=(B, s_q // block_q),
            in_specs=in_specs,
            out_specs=out_specs,
        ),
        compiler_params=pltpu.CompilerParams(
            dimension_semantics=("parallel", "parallel"),
            vmem_limit_bytes=int(vmem_limit)),
        cost_estimate=cost,
    )(q, kp, vp, w_q, b_q, w_o, b_o)

    if return_attn:
        return results[0], results[1]
    out = results[0] if isinstance(results, (tuple, list)) else results
    return out, None


def multi_head_attention(q, k, v, params, *, num_heads,
                         compute_dtype=jnp.bfloat16, block_q=None,
                         return_attn=True, attn_dtype=None,
                         single_buffer_constants=True):
    """q: (B, S_q, D), k/v: (B, S_kv, D) float32.

    Returns (out (B, S_q, D) f32, attn (B, H, S_q, S_kv) attn_dtype or None).
    Pass attn_dtype=jnp.bfloat16 to halve the O(H*S^2) writeback, or
    return_attn=False to drop it entirely.
    """
    B, s_q, D = q.shape
    s_kv = k.shape[1]
    assert k.shape == v.shape and k.shape[0] == B and k.shape[2] == D
    assert D % num_heads == 0
    d_k = D // num_heads
    scale = 1.0 / math.sqrt(float(d_k))
    if attn_dtype is None:
        attn_dtype = jnp.float32          # module fidelity by default

    cd_bytes = jnp.dtype(compute_dtype).itemsize
    attn_bytes = jnp.dtype(attn_dtype).itemsize if return_attn else 0
    budget = _vmem_budget_bytes()
    if block_q is None:
        block_q = _pick_block_q(s_q, s_kv, D, num_heads, cd_bytes, attn_bytes,
                                single_buffer_constants, budget)
    assert s_q % block_q == 0

    # Host-side prep: cast activations to the compute dtype (halves input DMA),
    # transpose nn.Linear weights to (d_in, d_out), fold 1/sqrt(d_k) into Wq/bq,
    # stack Wk/Wv so one DMA stream feeds the projection kernel.
    qc = q.astype(compute_dtype)
    kc = k.astype(compute_dtype)
    vc = v.astype(compute_dtype)
    w_q = (params["wq"].T * scale).astype(compute_dtype)                    # (D,D)
    b_q = (params["bq"] * scale).reshape(1, D).astype(jnp.float32)          # (1,D)
    w_kv = jnp.stack([params["wk"].T, params["wv"].T], 0).astype(compute_dtype)
    b_kv = jnp.stack([params["bk"], params["bv"]], 0).reshape(2, 1, D).astype(jnp.float32)
    w_o = params["wo"].T.astype(compute_dtype)                              # (D,D)
    b_o = params["bo"].reshape(1, D).astype(jnp.float32)                    # (1,D)

    def run(single_buffer):
        kp, vp = _project_kv(kc, vc, w_kv, b_kv, compute_dtype,
                             single_buffer, budget)
        return _attention_call(qc, kp, vp, w_q, b_q, w_o, b_o,
                               num_heads=num_heads, d_k=d_k,
                               compute_dtype=compute_dtype, block_q=block_q,
                               return_attn=return_attn, attn_dtype=attn_dtype,
                               single_buffer=single_buffer, vmem_limit=budget)

    if single_buffer_constants:
        try:
            return run(True)
        except Exception:
            # pipeline_mode=pl.Buffered(1) not supported by this JAX build /
            # backend combination; fall back to default double buffering.
            pass
    return run(False)


# ----------------------------------------------------------------------------
# Reference + init (pure JAX, matches the PyTorch module in eval mode)
# ----------------------------------------------------------------------------

def init_params(key, d_model):
    """Deterministic nn.Linear-style init (uniform +-1/sqrt(fan_in))."""
    bound = 1.0 / math.sqrt(d_model)
    keys = jax.random.split(key, 8)

    def u(kk, shape):
        return jax.random.uniform(kk, shape, jnp.float32, -bound, bound)

    return {
        "wq": u(keys[0], (d_model, d_model)), "bq": u(keys[1], (d_model,)),
        "wk": u(keys[2], (d_model, d_model)), "bk": u(keys[3], (d_model,)),
        "wv": u(keys[4], (d_model, d_model)), "bv": u(keys[5], (d_model,)),
        "wo": u(keys[6], (d_model, d_model)), "bo": u(keys[7], (d_model,)),
    }


def reference_mha(q, k, v, params, *, num_heads):
    B, s_q, D = q.shape
    s_kv = k.shape[1]
    d_k = D // num_heads

    def lin(x, w, b):
        return x @ w.T + b

    Q = lin(q, params["wq"], params["bq"]).reshape(B, s_q, num_heads, d_k).transpose(0, 2, 1, 3)
    K = lin(k, params["wk"], params["bk"]).reshape(B, s_kv, num_heads, d_k).transpose(0, 2, 1, 3)
    V = lin(v, params["wv"], params["bv"]).reshape(B, s_kv, num_heads, d_k).transpose(0, 2, 1, 3)
    scores = jnp.einsum("bhqd,bhkd->bhqk", Q, K) / math.sqrt(d_k)
    attn = jax.nn.softmax(scores, axis=-1)
    ctx = jnp.einsum("bhqk,bhkd->bhqd", attn, V)
    ctx = ctx.transpose(0, 2, 1, 3).reshape(B, s_q, D)
    return lin(ctx, params["wo"], params["bo"]), attn


if __name__ == "__main__":
    B, S, d_model, num_heads = 2, 8, 32, 4

    key = jax.random.PRNGKey(0)
    k_p, k_q, k_k, k_v = jax.random.split(key, 4)
    params = init_params(k_p, d_model)
    q = jax.random.normal(k_q, (B, S, d_model), jnp.float32)
    k = jax.random.normal(k_k, (B, S, d_model), jnp.float32)
    v = jax.random.normal(k_v, (B, S, d_model), jnp.float32)

    out_gold, attn_gold = reference_mha(q, k, v, params, num_heads=num_heads)

    # f32 compute path: tight check against the pure-JAX reference.
    out32, attn32 = multi_head_attention(q, k, v, params, num_heads=num_heads,
                                         compute_dtype=jnp.float32)
    jax.block_until_ready(out32)
    jax.block_until_ready(attn32)
    assert out32.shape == (B, S, d_model)
    assert attn32.shape == (B, num_heads, S, S)
    assert jnp.allclose(out32, out_gold, atol=1e-4, rtol=1e-4)
    assert jnp.allclose(attn32, attn_gold, atol=1e-4, rtol=1e-4)

    # bf16 fast path (default): MXU-native matmuls with f32 accumulation.
    out16, attn16 = multi_head_attention(q, k, v, params, num_heads=num_heads)
    jax.block_until_ready(out16)
    jax.block_until_ready(attn16)
    assert jnp.allclose(out16, out_gold, atol=5e-2, rtol=5e-2)
    assert jnp.allclose(attn16.astype(jnp.float32), attn_gold, atol=3e-2, rtol=3e-2)

    # Bandwidth-saving variants: bf16 attention probabilities / no attn output.
    out_b, attn_b = multi_head_attention(q, k, v, params, num_heads=num_heads,
                                         attn_dtype=jnp.bfloat16)
    jax.block_until_ready(out_b)
    jax.block_until_ready(attn_b)
    assert jnp.allclose(attn_b.astype(jnp.float32), attn_gold, atol=3e-2, rtol=3e-2)

    out_n, attn_n = multi_head_attention(q, k, v, params, num_heads=num_heads,
                                         return_attn=False)
    jax.block_until_ready(out_n)
    assert attn_n is None
    assert jnp.allclose(out_n, out_gold, atol=5e-2, rtol=5e-2)

    print("KERNEL_OK")
</pallas_src>

<mosaic_0001>
module attributes {stable_mosaic.version = 11 : i64} {
  func.func @_kv_proj_kernel(%arg0: i32, %arg1: i32, %arg2: memref<1x8x32xf32, #tpu.memory_space<vmem>>, %arg3: memref<1x8x32xf32, #tpu.memory_space<vmem>>, %arg4: memref<2x32x32xf32, #tpu.memory_space<vmem>>, %arg5: memref<2x1x32xf32, #tpu.memory_space<vmem>>, %arg6: memref<1x8x32xf32, #tpu.memory_space<vmem>>, %arg7: memref<1x8x32xf32, #tpu.memory_space<vmem>>) attributes {dimension_semantics = [#tpu.dimension_semantics<parallel>, #tpu.dimension_semantics<parallel>], iteration_bounds = array<i64: 2, 1>, scalar_prefetch = 0 : i64, scratch_operands = 0 : i64, tpu.core_type = #tpu.core_type<tc>, window_params = [{transform_indices = @transform_0, window_bounds = array<i64: 1, 8, 32>}, {transform_indices = @transform_1, window_bounds = array<i64: 1, 8, 32>}, {pipeline_mode = #tpu.pipeline_mode<synchronous>, transform_indices = @transform_2, window_bounds = array<i64: 2, 32, 32>}, {pipeline_mode = #tpu.pipeline_mode<synchronous>, transform_indices = @transform_3, window_bounds = array<i64: 2, 1, 32>}, {transform_indices = @transform_4, window_bounds = array<i64: 1, 8, 32>}, {transform_indices = @transform_5, window_bounds = array<i64: 1, 8, 32>}]} {
    %c0 = arith.constant 0 : index
    %c0_0 = arith.constant 0 : index
    %c0_1 = arith.constant 0 : index
    %0 = vector.load %arg2[%c0, %c0_0, %c0_1] : memref<1x8x32xf32, #tpu.memory_space<vmem>>, vector<1x8x32xf32>
    %1 = vector.shape_cast %0 : vector<1x8x32xf32> to vector<8x32xf32>
    %c0_2 = arith.constant 0 : index
    %c0_3 = arith.constant 0 : index
    %c0_4 = arith.constant 0 : index
    %2 = vector.load %arg4[%c0_2, %c0_3, %c0_4] : memref<2x32x32xf32, #tpu.memory_space<vmem>>, vector<1x32x32xf32>
    %3 = vector.shape_cast %2 : vector<1x32x32xf32> to vector<32x32xf32>
    %cst = arith.constant dense<0.000000e+00> : vector<8x32xf32>
    %4 = tpu.matmul %1, %3, %cst {dimension_numbers = #tpu.dot_dimension_numbers<[1], [0], [0], [1], [0, 0, 1, 1], [], []>} : vector<8x32xf32>, vector<32x32xf32>, vector<8x32xf32> -> vector<8x32xf32>
    %c0_5 = arith.constant 0 : index
    %c0_6 = arith.constant 0 : index
    %c0_7 = arith.constant 0 : index
    %5 = vector.load %arg5[%c0_5, %c0_6, %c0_7] : memref<2x1x32xf32, #tpu.memory_space<vmem>>, vector<1x1x32xf32>
    %6 = vector.shape_cast %5 : vector<1x1x32xf32> to vector<1x32xf32>
    %7 = vector.broadcast %6 : vector<1x32xf32> to vector<8x32xf32>
    %8 = arith.addf %4, %7 : vector<8x32xf32>
    %c0_8 = arith.constant 0 : index
    %c0_9 = arith.constant 0 : index
    %c0_10 = arith.constant 0 : index
    %9 = vector.load %arg3[%c0_8, %c0_9, %c0_10] : memref<1x8x32xf32, #tpu.memory_space<vmem>>, vector<1x8x32xf32>
    %10 = vector.shape_cast %9 : vector<1x8x32xf32> to vector<8x32xf32>
    %c1 = arith.constant 1 : index
    %c0_11 = arith.constant 0 : index
    %c0_12 = arith.constant 0 : index
    %11 = vector.load %arg4[%c1, %c0_11, %c0_12] : memref<2x32x32xf32, #tpu.memory_space<vmem>>, vector<1x32x32xf32>
    %12 = vector.shape_cast %11 : vector<1x32x32xf32> to vector<32x32xf32>
    %cst_13 = arith.constant dense<0.000000e+00> : vector<8x32xf32>
    %13 = tpu.matmul %10, %12, %cst_13 {dimension_numbers = #tpu.dot_dimension_numbers<[1], [0], [0], [1], [0, 0, 1, 1], [], []>} : vector<8x32xf32>, vector<32x32xf32>, vector<8x32xf32> -> vector<8x32xf32>
    %c1_14 = arith.constant 1 : index
    %c0_15 = arith.constant 0 : index
    %c0_16 = arith.constant 0 : index
    %14 = vector.load %arg5[%c1_14, %c0_15, %c0_16] : memref<2x1x32xf32, #tpu.memory_space<vmem>>, vector<1x1x32xf32>
    %15 = vector.shape_cast %14 : vector<1x1x32xf32> to vector<1x32xf32>
    %16 = vector.broadcast %15 : vector<1x32xf32> to vector<8x32xf32>
    %17 = arith.addf %13, %16 : vector<8x32xf32>
    %c0_17 = arith.constant 0 : index
    %c0_18 = arith.constant 0 : index
    %c0_19 = arith.constant 0 : index
    %18 = vector.load %arg6[%c0_17, %c0_18, %c0_19] : memref<1x8x32xf32, #tpu.memory_space<vmem>>, vector<1x8x32xf32>
    %19 = vector.shape_cast %18 : vector<1x8x32xf32> to vector<8x32xf32>
    %20 = vector.shape_cast %8 : vector<8x32xf32> to vector<1x8x32xf32>
    tpu.vector_store %arg6[%c0_17, %c0_18, %c0_19], %20 {strides = array<i32>} : memref<1x8x32xf32, #tpu.memory_space<vmem>>, vector<1x8x32xf32>,
    %c0_20 = arith.constant 0 : index
    %c0_21 = arith.constant 0 : index
    %c0_22 = arith.constant 0 : index
    %21 = vector.load %arg7[%c0_20, %c0_21, %c0_22] : memref<1x8x32xf32, #tpu.memory_space<vmem>>, vector<1x8x32xf32>
    %22 = vector.shape_cast %21 : vector<1x8x32xf32> to vector<8x32xf32>
    %23 = vector.shape_cast %17 : vector<8x32xf32> to vector<1x8x32xf32>
    tpu.vector_store %arg7[%c0_20, %c0_21, %c0_22], %23 {strides = array<i32>} : memref<1x8x32xf32, #tpu.memory_space<vmem>>, vector<1x8x32xf32>,
    return
  }
  func.func @transform_0(%arg0: i32, %arg1: i32) -> (i32, i32, i32) {
    %c0_i32 = arith.constant 0 : i32
    %c0_i32_0 = arith.constant 0 : i32
    return %arg0, %arg1, %c0_i32 : i32, i32, i32
  }
  func.func @transform_1(%arg0: i32, %arg1: i32) -> (i32, i32, i32) {
    %c0_i32 = arith.constant 0 : i32
    %c0_i32_0 = arith.constant 0 : i32
    return %arg0, %arg1, %c0_i32 : i32, i32, i32
  }
  func.func @transform_2(%arg0: i32, %arg1: i32) -> (i32, i32, i32) {
    %c0_i32 = arith.constant 0 : i32
    %c0_i32_0 = arith.constant 0 : i32
    %c0_i32_1 = arith.constant 0 : i32
    %c0_i32_2 = arith.constant 0 : i32
    return %c0_i32, %c0_i32_0, %c0_i32_1 : i32, i32, i32
  }
  func.func @transform_3(%arg0: i32, %arg1: i32) -> (i32, i32, i32) {
    %c0_i32 = arith.constant 0 : i32
    %c0_i32_0 = arith.constant 0 : i32
    %c0_i32_1 = arith.constant 0 : i32
    %c0_i32_2 = arith.constant 0 : i32
    return %c0_i32, %c0_i32_0, %c0_i32_1 : i32, i32, i32
  }
  func.func @transform_4(%arg0: i32, %arg1: i32) -> (i32, i32, i32) {
    %c0_i32 = arith.constant 0 : i32
    %c0_i32_0 = arith.constant 0 : i32
    return %arg0, %arg1, %c0_i32 : i32, i32, i32
  }
  func.func @transform_5(%arg0: i32, %arg1: i32) -> (i32, i32, i32) {
    %c0_i32 = arith.constant 0 : i32
    %c0_i32_0 = arith.constant 0 : i32
    return %arg0, %arg1, %c0_i32 : i32, i32, i32
  }
}

module attributes {stable_mosaic.version = 11 : i64} {
  func.func @_kv_proj_kernel(%arg0: i32, %arg1: i32, %arg2: memref<1x8x32xf32, #tpu.memory_space<vmem>>, %arg3: memref<1x8x32xf32, #tpu.memory_space<vmem>>, %arg4: memref<2x32x32xf32, #tpu.memory_space<vmem>>, %arg5: memref<2x1x32xf32, #tpu.memory_space<vmem>>, %arg6: memref<1x8x32xf32, #tpu.memory_space<vmem>>, %arg7: memref<1x8x32xf32, #tpu.memory_space<vmem>>) attributes {dimension_semantics = [#tpu.dimension_semantics<parallel>, #tpu.dimension_semantics<parallel>], iteration_bounds = array<i64: 2, 1>, scalar_prefetch = 0 : i64, scratch_operands = 0 : i64, tpu.core_type = #tpu.core_type<tc>, window_params = [{transform_indices = @transform_0, window_bounds = array<i64: 1, 8, 32>}, {transform_indices = @transform_1, window_bounds = array<i64: 1, 8, 32>}, {pipeline_mode = #tpu.pipeline_mode<synchronous>, transform_indices = @transform_2, window_bounds = array<i64: 2, 32, 32>}, {pipeline_mode = #tpu.pipeline_mode<synchronous>, transform_indices = @transform_3, window_bounds = array<i64: 2, 1, 32>}, {transform_indices = @transform_4, window_bounds = array<i64: 1, 8, 32>}, {transform_indices = @transform_5, window_bounds = array<i64: 1, 8, 32>}]} {
    %c0 = arith.constant 0 : index
    %c0_0 = arith.constant 0 : index
    %c0_1 = arith.constant 0 : index
    %0 = vector.load %arg2[%c0, %c0_0, %c0_1] : memref<1x8x32xf32, #tpu.memory_space<vmem>>, vector<1x8x32xf32>
    %1 = vector.shape_cast %0 : vector<1x8x32xf32> to vector<8x32xf32>
    %c0_2 = arith.constant 0 : index
    %c0_3 = arith.constant 0 : index
    %c0_4 = arith.constant 0 : index
    %2 = vector.load %arg4[%c0_2, %c0_3, %c0_4] : memref<2x32x32xf32, #tpu.memory_space<vmem>>, vector<1x32x32xf32>
    %3 = vector.shape_cast %2 : vector<1x32x32xf32> to vector<32x32xf32>
    %cst = arith.constant dense<0.000000e+00> : vector<8x32xf32>
    %4 = tpu.matmul %1, %3, %cst {dimension_numbers = #tpu.dot_dimension_numbers<[1], [0], [0], [1], [0, 0, 1, 1], [], []>} : vector<8x32xf32>, vector<32x32xf32>, vector<8x32xf32> -> vector<8x32xf32>
    %c0_5 = arith.constant 0 : index
    %c0_6 = arith.constant 0 : index
    %c0_7 = arith.constant 0 : index
    %5 = vector.load %arg5[%c0_5, %c0_6, %c0_7] : memref<2x1x32xf32, #tpu.memory_space<vmem>>, vector<1x1x32xf32>
    %6 = vector.shape_cast %5 : vector<1x1x32xf32> to vector<1x32xf32>
    %7 = vector.broadcast %6 : vector<1x32xf32> to vector<8x32xf32>
    %8 = arith.addf %4, %7 : vector<8x32xf32>
    %c0_8 = arith.constant 0 : index
    %c0_9 = arith.constant 0 : index
    %c0_10 = arith.constant 0 : index
    %9 = vector.load %arg3[%c0_8, %c0_9, %c0_10] : memref<1x8x32xf32, #tpu.memory_space<vmem>>, vector<1x8x32xf32>
    %10 = vector.shape_cast %9 : vector<1x8x32xf32> to vector<8x32xf32>
    %c1 = arith.constant 1 : index
    %c0_11 = arith.constant 0 : index
    %c0_12 = arith.constant 0 : index
    %11 = vector.load %arg4[%c1, %c0_11, %c0_12] : memref<2x32x32xf32, #tpu.memory_space<vmem>>, vector<1x32x32xf32>
    %12 = vector.shape_cast %11 : vector<1x32x32xf32> to vector<32x32xf32>
    %cst_13 = arith.constant dense<0.000000e+00> : vector<8x32xf32>
    %13 = tpu.matmul %10, %12, %cst_13 {dimension_numbers = #tpu.dot_dimension_numbers<[1], [0], [0], [1], [0, 0, 1, 1], [], []>} : vector<8x32xf32>, vector<32x32xf32>, vector<8x32xf32> -> vector<8x32xf32>
    %c1_14 = arith.constant 1 : index
    %c0_15 = arith.constant 0 : index
    %c0_16 = arith.constant 0 : index
    %14 = vector.load %arg5[%c1_14, %c0_15, %c0_16] : memref<2x1x32xf32, #tpu.memory_space<vmem>>, vector<1x1x32xf32>
    %15 = vector.shape_cast %14 : vector<1x1x32xf32> to vector<1x32xf32>
    %16 = vector.broadcast %15 : vector<1x32xf32> to vector<8x32xf32>
    %17 = arith.addf %13, %16 : vector<8x32xf32>
    %c0_17 = arith.constant 0 : index
    %c0_18 = arith.constant 0 : index
    %c0_19 = arith.constant 0 : index
    %18 = vector.load %arg6[%c0_17, %c0_18, %c0_19] : memref<1x8x32xf32, #tpu.memory_space<vmem>>, vector<1x8x32xf32>
    %19 = vector.shape_cast %18 : vector<1x8x32xf32> to vector<8x32xf32>
    %20 = vector.shape_cast %8 : vector<8x32xf32> to vector<1x8x32xf32>
    tpu.vector_store %arg6[%c0_17, %c0_18, %c0_19], %20 {strides = array<i32>} : memref<1x8x32xf32, #tpu.memory_space<vmem>>, vector<1x8x32xf32>,
    %c0_20 = arith.constant 0 : index
    %c0_21 = arith.constant 0 : index
    %c0_22 = arith.constant 0 : index
    %21 = vector.load %arg7[%c0_20, %c0_21, %c0_22] : memref<1x8x32xf32, #tpu.memory_space<vmem>>, vector<1x8x32xf32>
    %22 = vector.shape_cast %21 : vector<1x8x32xf32> to vector<8x32xf32>
    %23 = vector.shape_cast %17 : vector<8x32xf32> to vector<1x8x32xf32>
    tpu.vector_store %arg7[%c0_20, %c0_21, %c0_22], %23 {strides = array<i32>} : memref<1x8x32xf32, #tpu.memory_space<vmem>>, vector<1x8x32xf32>,
    return
  }
  func.func @transform_0(%arg0: i32, %arg1: i32) -> (i32, i32, i32) {
    %c0_i32 = arith.constant 0 : i32
    %c0_i32_0 = arith.constant 0 : i32
    return %arg0, %arg1, %c0_i32 : i32, i32, i32
  }
  func.func @transform_1(%arg0: i32, %arg1: i32) -> (i32, i32, i32) {
    %c0_i32 = arith.constant 0 : i32
    %c0_i32_0 = arith.constant 0 : i32
    return %arg0, %arg1, %c0_i32 : i32, i32, i32
  }
  func.func @transform_2(%arg0: i32, %arg1: i32) -> (i32, i32, i32) {
    %c0_i32 = arith.constant 0 : i32
    %c0_i32_0 = arith.constant 0 : i32
    %c0_i32_1 = arith.constant 0 : i32
    %c0_i32_2 = arith.constant 0 : i32
    return %c0_i32, %c0_i32_0, %c0_i32_1 : i32, i32, i32
  }
  func.func @transform_3(%arg0: i32, %arg1: i32) -> (i32, i32, i32) {
    %c0_i32 = arith.constant 0 : i32
    %c0_i32_0 = arith.constant 0 : i32
    %c0_i32_1 = arith.constant 0 : i32
    %c0_i32_2 = arith.constant 0 : i32
    return %c0_i32, %c0_i32_0, %c0_i32_1 : i32, i32, i32
  }
  func.func @transform_4(%arg0: i32, %arg1: i32) -> (i32, i32, i32) {
    %c0_i32 = arith.constant 0 : i32
    %c0_i32_0 = arith.constant 0 : i32
    return %arg0, %arg1, %c0_i32 : i32, i32, i32
  }
  func.func @transform_5(%arg0: i32, %arg1: i32) -> (i32, i32, i32) {
    %c0_i32 = arith.constant 0 : i32
    %c0_i32_0 = arith.constant 0 : i32
    return %arg0, %arg1, %c0_i32 : i32, i32, i32
  }
}

</mosaic_0001>

<bundles_post_ra>
// kernel: tpu_custom_call.1
= control target key start
LH: loop header
LB: loop body
LE: loop exit
PB: predicated region body
PF: predicated region fallthrough
CT: control target
= control target key end

     0   :  { %s1135_s0 = inlined_call_operand.hbm [shape: f32[2,8,32], index: 0, kind: input, shape index: {}]   ;;  %s1136_s1 = inlined_call_operand.hbm [shape: f32[2,8,32], index: 1, kind: input, shape index: {}]   ;;  %s1137_s2 = inlined_call_operand.hbm [shape: f32[2,32,32], index: 2, kind: input, shape index: {}]   ;;  %s1138_s3 = inlined_call_operand.vmem [shape: f32[2,1,32], index: 3, kind: input, shape index: {}]   ;;  %s1139_s4 = inlined_call_operand.hbm [shape: f32[2,8,32], index: 4, kind: output, shape index: {0}]   ;;  %s1140_s5 = inlined_call_operand.hbm [shape: f32[2,8,32], index: 5, kind: output, shape index: {1}]  }
   0x1   :  { %1145 = sst [smem:[#allocation21_spill]] %s1137_s2 }
   0x2   :  { %11 = vsyncpa [#allocation3], 0 }
   0x3   :  { %13 = vsyncpa [#allocation3 + $0x1], 0 }
   0x4   :  { %14 = vsyncpa [#allocation6], 0 }
   0x5   :  { %16 = vsyncpa [#allocation6 + $0x1], 0 }
   0x6   :  { %17 = vsyncpa [#allocation4], 0 }
   0x7   :  { %19 = vsyncpa [#allocation4 + $0x1], 0 }
   0x8   :  { %20 = vsyncpa [#allocation10], 0 }
   0x9   :  { %22 = vsyncpa [#allocation10 + $0x1], 0  ;;  %s941_s18 = smov 0   ;;  %s943_s19 = smov 0  }
   0xa   :  { %s945_s20 = smov 0   ;;  %s947_s21 = smov 0  }
   0xb   :  { %s949_s22 = smov 0   ;;  %s951_s23 = smov 0  }
   0xc LB: > { %1146 = sst [smem:[#allocation16_spill]] %s894_s20  ;;  %s972_s24 = sadd.s32 4294967295, %s906_s23   ;;  %s906_s23 = sphi %s951_s23, %s28_s23   ;;  %s902_s22 = sphi %s949_s22, %s1161_s22   ;;  %s898_s21 = sphi %s947_s21, %s1160_s21   ;;  %s894_s20 = sphi %s945_s20, %s1159_s20   ;;  %s890_s19 = sphi %s943_s19, %s1163_s19   ;;  %s886_s18 = sphi %s941_s18, %s1162_s18  }
   0xd   : > { %1147 = sst [smem:[#allocation17_spill]] %s902_s22  ;;  %p585_p0 = scmp.ge.s32.totalorder %s906_s23, 1 }
   0xe   : > { %p63_p1 = scmp.eq.s32.totalorder %s972_s24, 0  ;;  %p199_p2 = scmp.lt.s32.totalorder %s906_s23, 3 }
   0xf   : > { %s1148_s2 = sld [smem:[#allocation21_spill]]  ;;  %s908_s29 = smov [#allocation7]  }
  0x10   : > { %p980_p3 = pnand %p585_p0, %p199_p2  ;;  %s212_s30 = sshll.u32 %s908_s29, 4  ;;  %s213_s30 = int_to_ptr.vmem [resolvable:$true] %s212_s30 }
  0x11   : > { %p587_p6 = scmp.ge.s32.totalorder %s906_s23, 2  ;;  %s909_s6 = smov 128  }
  0x12   : > { %p619_p4 = pneg %p980_p3  ;;  %s910_s7 = smov 8  }
  0x13   : > { %s584_s8 = sadd.s32 4294967294, %s906_s23   ;;  %s40_s9 = sadd.s32 1, %s902_s22 }
  0x14   : > { %p620_p5 = pnand %p619_p4, %p63_p1  ;;  %s49_s10 = sadd.s32 1, %s894_s20 }
  0x15   : > { %s210_s27 = sshll.u32 %s1148_s2, 4  ;;  %p42_p7 = scmp.ge.s32.totalorder %s40_s9, 2  ;;  %s211_s27 = int_to_ptr.hbm [resolvable:$true] %s210_s27 }
  0x16   : > { %622 = dma.hbm_to_vmem [thread:$0]  (!%p620_p5), %s211_s27, 1024, %s213_s30, [#allocation6], %s909_s6, %s909_s6, %s910_s7  }
  0x17   : > { %p56_p8 = scmp.ne.s32.totalorder %s894_s20, %s890_s19  ;;  %p57_p9 = scmp.eq.s32.totalorder %s906_s23, 0 }
  0x18   : > { %p62_p10 = scmp.ne.s32.totalorder %s890_s19, %s886_s18  ;;  %s1165_s9 = smov (%p42_p7, %s40_s9), 0 }
  0x19   : > { %1150 = sst [smem:[#allocation18_spill]] %s1165_s9  ;;  %p999_p11 = por %p57_p9, %p56_p8 }
  0x1a   : > { %p1005_p12 = por %p63_p1, %p62_p10  ;;  %s44_s13 = ssub.s32 %s902_s22, %s1165_s9 }
  0x1b   : > { %p158_p13 = scmp.eq.s32.totalorder %s972_s24, 1  ;;  %p47_p0 = scmp.eq.s32.totalorder %s44_s13, 0 }
  0x1c   : > { %p164_p2 = scmp.eq.s32.totalorder %s584_s8, 1  ;;  %p638_p5 = scmp.lt.s32.totalorder %s906_s23, 2 }
  0x1d   : > { %p1012_p4 = por %p158_p13, %p56_p8  ;;  %s229_s17 = sand.u32 1, %s894_s20  }
  0x1e   : > { %s1018_s15 = scalar_select %p47_p0, %s894_s20, %s49_s10  }
  0x1f   : > { %p1020_p7 = por %p164_p2, %p62_p10  ;;  %s588_s25 = sshll.u32 %s229_s17, 3 }
  0x20   : > { %1154 = sst [smem:[#allocation19_spill]] %s1018_s15  ;;  %s589_s26 = sshll.u32 %s902_s22, 3 }
  0x21   : > { %s1155_s16 = scalar_select %p1020_p7, 1, 0 }
  0x22   : > { %s238_s30 = scalar_lea.hbm %s1135_s0, %s589_s26  ;;  %s233_s6 = scalar_lea.vmem [#allocation2], %s588_s25 }
  0x23   : > { %1156 = sst [smem:[#allocation20_spill]] %s1155_s16  ;;  %s242_s7 = sshll.u32 %s233_s6, 4  ;;  %s243_s7 = int_to_ptr.vmem [resolvable:$true] %s242_s7 }
  0x24   : > { %s240_s8 = sshll.u32 %s238_s30, 4  ;;  %p624_p8 = pnand %p638_p5, %p999_p11  ;;  %s241_s8 = int_to_ptr.hbm [resolvable:$true] %s240_s8 }
  0x25   : > { %s258_s2 = scalar_lea.hbm %s1136_s1, %s589_s26  ;;  %s249_s9 = sand.u32 1, %s906_s23  }
  0x26   : > { %s230_s15 = scalar_lea.sflag [#allocation3], %s229_s17  ;;  %s260_s20 = sshll.u32 %s258_s2, 4  ;;  %s261_s20 = int_to_ptr.hbm [resolvable:$true] %s260_s20 }
  0x27   : > { %626 = dma.hbm_to_vmem [thread:$0]  (!%p624_p8), %s241_s8, 128, %s243_s7, %s230_s15  }
  0x28   : > { %s253_s22 = scalar_lea.vmem [#allocation5], %s588_s25  ;;  %s250_s27 = scalar_lea.sflag [#allocation6], %s249_s9 }
  0x29   : > { %s262_s16 = sshll.u32 %s253_s22, 4  ;;  %271 = sbr.rel (%p980_p3) target bundleno = 203 (0xcb), region = 36  ;;  %s263_s16 = int_to_ptr.vmem [resolvable:$true] %s262_s16 }
  0x2a   : > { %629 = dma.hbm_to_vmem [thread:$0]  (!%p624_p8), %s261_s20, 128, %s263_s16, %s250_s27  }
  0x2b   : > { %s1038_s11 = sand.u32 (!%p980_p3), 1, %s890_s19  }
  0x2c   : > { %s1041_s26 = sshll.u32 (!%p980_p3), %s1038_s11, 3  ;;  %s274_s15 = scalar_lea.sflag (!%p980_p3), [#allocation3], %s1038_s11 }
  0x2d   : > { %s277_s2 = scalar_lea.vmem (!%p980_p3), [#allocation2], %s1041_s26 }
  0x2e   : > { %865 = dma.done.wait (%p1005_p12), %s274_s15, 128  }
  0x2f   : > { %867 = vsyncadd (%p1005_p12), %s274_s15, 4294967168  ;;  %s283_s20 = sand.u32 1, %s972_s24   ;;  %s287_s28 = scalar_lea.vmem [#allocation5], %s1041_s26 }
  0x30   : > { %s284_s22 = scalar_lea.sflag [#allocation6], %s283_s20 }
  0x31   : > { %869 = dma.done.wait (%p1005_p12), %s284_s22, 128  }
  0x32   : > { %871 = vsyncadd (%p1005_p12), %s284_s22, 4294967168 }
  0x33   : > { %873 = dma.done.wait (%p63_p1), [#allocation6], 1024  }
  0x34   : > { %875 = vsyncadd (%p63_p1), [#allocation6], 4294966272  ;;  %v334_v0 = vld [vmem:[#allocation7 + $0x18] sm:$0xff]  ;;  %v333_v2 = vld [vmem:[#allocation7 + $0x10] sm:$0xff]  ;;  %vm339_vm0 = vcmask 261120   ;;  %s603_s24 = sshll.u32 %s898_s21, 3 }
  0x35   : > { %v368_v1 = vld [vmem:[#allocation7 + $0x38] sm:$0xff]  ;;  %355 = vmatpush.msra.mxu0 %v334_v0  ;;  %v367_v3 = vld [vmem:[#allocation7 + $0x30] sm:$0xff]  ;;  %v332_v4 = vld [vmem:[#allocation7 + $0x8] sm:$0xff]  ;;  %s416_s16 = scalar_lea.hbm %s1139_s4, %s603_s24  ;;  %s431_s29 = scalar_lea.hbm %s1140_s5, %s603_s24 }
  0x36   : > { %389 = vmatpush.msra.mxu1 %v368_v1  ;;  %v366_v5 = vld [vmem:[#allocation7 + $0x28] sm:$0xff]  ;;  %v331_v6 = vld [vmem:[#allocation7] sm:$0xff]  ;;  %v363_v9 = vld [vmem:[%s287_s28] sm:$0xff]  ;;  %s322_s10 = scalar_lea.vmem [#allocation8], %s1041_s26  ;;  %s420_s21 = sshll.u32 %s416_s16, 4  ;;  %s421_s21 = int_to_ptr.hbm [resolvable:$true] %s420_s21 }
  0x37   : > { %356 = vmatpush.msra.mxu0 %v333_v2  ;;  %v365_v7 = vld [vmem:[#allocation7 + $0x20] sm:$0xff]  ;;  %s1075_s13 = sshll.u32 %s322_s10, 4  ;;  %s329_s27 = scalar_lea.vmem [#allocation9], %s1041_s26  ;;  %s419_s13 = int_to_ptr.vmem [resolvable:$true] %s1075_s13 }
  0x38   : > { %390 = vmatpush.msra.mxu1 %v367_v3  ;;  %v330_v8 = vld [vmem:[%s277_s2] sm:$0xff]  ;;  %s1078_s15 = sshll.u32 %s329_s27, 4  ;;  %s435_s2 = sshll.u32 %s431_s29, 4  ;;  %s434_s15 = int_to_ptr.vmem [resolvable:$true] %s1078_s15  ;;  %s1082_s2 = int_to_ptr.hbm [resolvable:$true] %s435_s2 }
  0x39   : > { %357 = vmatpush.msra.mxu0 %v332_v4  ;;  %v692_v10 = vld [vmem:[%s1138_s3] ss:$0 sm:$0xff]  ;;  %v693_v11 = vld [vmem:[%s1138_s3 + $0x1] ss:$0 sm:$0xff]  ;;  %s400_s20 = scalar_lea.sflag [#allocation4], %s1038_s11  ;;  %s798_s22 = sshra.s32 %s421_s21, 4  ;;  %s799_s22 = int_to_ptr.hbm [resolvable:$true] %s798_s22 }
  0x3a   : > { %391 = vmatpush.msra.mxu1 %v366_v5  ;;  %s800_s26 = scalar_lea.hbm %s799_s22, 8  ;;  %s804_s9 = scalar_lea.hbm %s1139_s4, 16 }
  0x3b   : > { %358 = vmatpush.msra.mxu0 %v331_v6  ;;  %p801_p1 = scmp.ne.s32.totalorder %s799_s22, %s800_s26  ;;  %p805_p10 = scmp.lt.s32.totalorder %s799_s22, %s1139_s4 }
  0x3c   : > { %392 = vmatpush.msra.mxu1 %v365_v7  ;;  %598 = vmatmul.msk.f32.vlgmr.msra.gmra.mxu0 %vm339_vm0, %v330_v8  ;;  %p806_p11 = scmp.lt.s32.totalorder %s804_s9, %s800_s26 }
  0x3d   : > { %600 = vmatmul.msk.f32.vlgmr.msra.gmra.mxu1 %vm339_vm0, %v363_v9  ;;  %p802_p3 = pnand %p801_p1, %p1012_p4 }
  0x3e   : > { %p807_p12 = por %p806_p11, %p805_p10 }
  0x3f   : > { %p803_p9 = pneg %p802_p3 }
  0x41   : > { %p808_p13 = pnand %p807_p12, %p803_p9 }
  0xb9   : > { %v360_v12 = vpop.f32.mrf.mxu0 }
  0xba   : > { %v394_v13 = vpop.f32.mrf.mxu1  ;;  %v361_v14 = vadd.f32 %v692_v10, %v360_v12 }
  0xbb   : > { %v395_v15 = vadd.f32 %v693_v11, %v394_v13 }
  0xbc   : > { %397 = vst.msk [vmem:[%s322_s10] sm:$0xff] %vm339_vm0, %v361_v14 }
  0xbd   : > { %811 = shalt.err (!%p808_p13)
}
  0xbe   : > { %615 = dma.vmem_to_hbm [thread:$0]  (%p1012_p4), %s419_s13, 128, %s421_s21, %s400_s20   ;;  %398 = vst.msk [vmem:[%s329_s27] sm:$0xff] %vm339_vm0, %v395_v15 }
  0xbf   : > { %s405_s17 = scalar_lea.sflag [#allocation10], %s1038_s11  ;;  %s826_s25 = sshra.s32 %s1082_s2, 4  ;;  %s827_s25 = int_to_ptr.hbm [resolvable:$true] %s826_s25 }
  0xc0   : > { %s828_s29 = scalar_lea.hbm %s827_s25, 8  ;;  %s832_s7 = scalar_lea.hbm %s1140_s5, 16 }
  0xc1   : > { %p829_p0 = scmp.ne.s32.totalorder %s827_s25, %s828_s29  ;;  %p833_p8 = scmp.lt.s32.totalorder %s827_s25, %s1140_s5 }
  0xc2   : > { %p834_p1 = scmp.lt.s32.totalorder %s832_s7, %s828_s29 }
  0xc3   : > { %p830_p2 = pnand %p829_p0, %p1012_p4 }
  0xc4   : > { %p835_p3 = por %p834_p1, %p833_p8 }
  0xc5   : > { %p831_p5 = pneg %p830_p2 }
  0xc7   : > { %p836_p9 = pnand %p835_p3, %p831_p5 }
  0xc9   : > { %839 = shalt.err (!%p836_p9)
}
  0xca   : > { %616 = dma.vmem_to_hbm [thread:$0]  (%p1012_p4), %s434_s15, 128, %s1082_s2, %s405_s17  }
  0xcb PF: > { %s447_s13 = sand.u32 1, %s886_s18   ;;  %p631_p10 = pnand %p587_p6, %p1020_p7 }
  0xcc   : > { %s448_s21 = scalar_lea.sflag [#allocation4], %s447_s13 }
  0xcd   : > { %p632_p11 = pneg %p631_p10 }
  0xcf   : > { %877 = dma.done.wait (%p632_p11), %s448_s21, 128  }
  0xd0   : > { %879 = vsyncadd (%p632_p11), %s448_s21, 4294967168  ;;  %s458_s27 = scalar_lea.sflag [#allocation10], %s447_s13 }
  0xd1   : > { %881 = dma.done.wait (%p632_p11), %s458_s27, 128  }
  0xd2   : > { %883 = vsyncadd (%p632_p11), %s458_s27, 4294967168  ;;  %s28_s23 = sadd.s32 1, %s906_s23   ;;  %s1158_s14 = sld [smem:[#allocation16_spill]] }
  0xd3   : > { %p25_p12 = scmp.ge.s32.totalorder %s28_s23, 4   ;;  %s1159_s20 = sld [smem:[#allocation19_spill]] }
  0xd4   : > { %s1160_s21 = sld [smem:[#allocation17_spill]]  ;;  %s1162_s18 = smov %s890_s19 }
  0xd5   : > { %s1161_s22 = sld [smem:[#allocation18_spill]]  ;;  %27 = sbr.rel (!%p25_p12) target bundleno = 12 (0xc), region = 117 }
  0xd8   : > { %s1163_s19 = smov %s1158_s14 }
  0xda   :  { %464 = vsyncpa [#allocation3], 1 }
  0xdb   :  { %466 = vsyncpa [#allocation3 + $0x1], 1 }
  0xdc   :  { %467 = vsyncpa [#allocation6], 1 }
  0xdd   :  { %469 = vsyncpa [#allocation6 + $0x1], 1 }
  0xde   :  { %470 = vsyncpa [#allocation4], 1 }
  0xdf   :  { %472 = vsyncpa [#allocation4 + $0x1], 1 }
  0xe0   :  { %473 = vsyncpa [#allocation10], 1 }
  0xe1   :  { %475 = vsyncpa [#allocation10 + $0x1], 1 }

// kernel: tpu_custom_call.1
= control target key start
LH: loop header
LB: loop body
LE: loop exit
PB: predicated region body
PF: predicated region fallthrough
CT: control target
= control target key end

     0   :  { %s1135_s0 = inlined_call_operand.hbm [shape: f32[2,8,32], index: 0, kind: input, shape index: {}]   ;;  %s1136_s1 = inlined_call_operand.hbm [shape: f32[2,8,32], index: 1, kind: input, shape index: {}]   ;;  %s1137_s2 = inlined_call_operand.hbm [shape: f32[2,32,32], index: 2, kind: input, shape index: {}]   ;;  %s1138_s3 = inlined_call_operand.vmem [shape: f32[2,1,32], index: 3, kind: input, shape index: {}]   ;;  %s1139_s4 = inlined_call_operand.hbm [shape: f32[2,8,32], index: 4, kind: output, shape index: {0}]   ;;  %s1140_s5 = inlined_call_operand.hbm [shape: f32[2,8,32], index: 5, kind: output, shape index: {1}]  }
   0x1   :  { %1145 = sst [smem:[#allocation21_spill]] %s1137_s2 }
   0x2   :  { %11 = vsyncpa [#allocation3], 0 }
   0x3   :  { %13 = vsyncpa [#allocation3 + $0x1], 0 }
   0x4   :  { %14 = vsyncpa [#allocation6], 0 }
   0x5   :  { %16 = vsyncpa [#allocation6 + $0x1], 0 }
   0x6   :  { %17 = vsyncpa [#allocation4], 0 }
   0x7   :  { %19 = vsyncpa [#allocation4 + $0x1], 0 }
   0x8   :  { %20 = vsyncpa [#allocation10], 0 }
   0x9   :  { %22 = vsyncpa [#allocation10 + $0x1], 0  ;;  %s941_s18 = smov 0   ;;  %s943_s19 = smov 0  }
   0xa   :  { %s945_s20 = smov 0   ;;  %s947_s21 = smov 0  }
   0xb   :  { %s949_s22 = smov 0   ;;  %s951_s23 = smov 0  }
   0xc LB: > { %1146 = sst [smem:[#allocation16_spill]] %s894_s20  ;;  %s972_s24 = sadd.s32 4294967295, %s906_s23   ;;  %s906_s23 = sphi %s951_s23, %s28_s23   ;;  %s902_s22 = sphi %s949_s22, %s1161_s22   ;;  %s898_s21 = sphi %s947_s21, %s1160_s21   ;;  %s894_s20 = sphi %s945_s20, %s1159_s20   ;;  %s890_s19 = sphi %s943_s19, %s1163_s19   ;;  %s886_s18 = sphi %s941_s18, %s1162_s18  }
   0xd   : > { %1147 = sst [smem:[#allocation17_spill]] %s902_s22  ;;  %p585_p0 = scmp.ge.s32.totalorder %s906_s23, 1 }
   0xe   : > { %p63_p1 = scmp.eq.s32.totalorder %s972_s24, 0  ;;  %p199_p2 = scmp.lt.s32.totalorder %s906_s23, 3 }
   0xf   : > { %s1148_s2 = sld [smem:[#allocation21_spill]]  ;;  %s908_s29 = smov [#allocation7]  }
  0x10   : > { %p980_p3 = pnand %p585_p0, %p199_p2  ;;  %s212_s30 = sshll.u32 %s908_s29, 4  ;;  %s213_s30 = int_to_ptr.vmem [resolvable:$true] %s212_s30 }
  0x11   : > { %p587_p6 = scmp.ge.s32.totalorder %s906_s23, 2  ;;  %s909_s6 = smov 128  }
  0x12   : > { %p619_p4 = pneg %p980_p3  ;;  %s910_s7 = smov 8  }
  0x13   : > { %s584_s8 = sadd.s32 4294967294, %s906_s23   ;;  %s40_s9 = sadd.s32 1, %s902_s22 }
  0x14   : > { %p620_p5 = pnand %p619_p4, %p63_p1  ;;  %s49_s10 = sadd.s32 1, %s894_s20 }
  0x15   : > { %s210_s27 = sshll.u32 %s1148_s2, 4  ;;  %p42_p7 = scmp.ge.s32.totalorder %s40_s9, 2  ;;  %s211_s27 = int_to_ptr.hbm [resolvable:$true] %s210_s27 }
  0x16   : > { %622 = dma.hbm_to_vmem [thread:$0]  (!%p620_p5), %s211_s27, 1024, %s213_s30, [#allocation6], %s909_s6, %s909_s6, %s910_s7  }
  0x17   : > { %p56_p8 = scmp.ne.s32.totalorder %s894_s20, %s890_s19  ;;  %p57_p9 = scmp.eq.s32.totalorder %s906_s23, 0 }
  0x18   : > { %p62_p10 = scmp.ne.s32.totalorder %s890_s19, %s886_s18  ;;  %s1165_s9 = smov (%p42_p7, %s40_s9), 0 }
  0x19   : > { %1150 = sst [smem:[#allocation18_spill]] %s1165_s9  ;;  %p999_p11 = por %p57_p9, %p56_p8 }
  0x1a   : > { %p1005_p12 = por %p63_p1, %p62_p10  ;;  %s44_s13 = ssub.s32 %s902_s22, %s1165_s9 }
  0x1b   : > { %p158_p13 = scmp.eq.s32.totalorder %s972_s24, 1  ;;  %p47_p0 = scmp.eq.s32.totalorder %s44_s13, 0 }
  0x1c   : > { %p164_p2 = scmp.eq.s32.totalorder %s584_s8, 1  ;;  %p638_p5 = scmp.lt.s32.totalorder %s906_s23, 2 }
  0x1d   : > { %p1012_p4 = por %p158_p13, %p56_p8  ;;  %s229_s17 = sand.u32 1, %s894_s20  }
  0x1e   : > { %s1018_s15 = scalar_select %p47_p0, %s894_s20, %s49_s10  }
  0x1f   : > { %p1020_p7 = por %p164_p2, %p62_p10  ;;  %s588_s25 = sshll.u32 %s229_s17, 3 }
  0x20   : > { %1154 = sst [smem:[#allocation19_spill]] %s1018_s15  ;;  %s589_s26 = sshll.u32 %s902_s22, 3 }
  0x21   : > { %s1155_s16 = scalar_select %p1020_p7, 1, 0 }
  0x22   : > { %s238_s30 = scalar_lea.hbm %s1135_s0, %s589_s26  ;;  %s233_s6 = scalar_lea.vmem [#allocation2], %s588_s25 }
  0x23   : > { %1156 = sst [smem:[#allocation20_spill]] %s1155_s16  ;;  %s242_s7 = sshll.u32 %s233_s6, 4  ;;  %s243_s7 = int_to_ptr.vmem [resolvable:$true] %s242_s7 }
  0x24   : > { %s240_s8 = sshll.u32 %s238_s30, 4  ;;  %p624_p8 = pnand %p638_p5, %p999_p11  ;;  %s241_s8 = int_to_ptr.hbm [resolvable:$true] %s240_s8 }
  0x25   : > { %s258_s2 = scalar_lea.hbm %s1136_s1, %s589_s26  ;;  %s249_s9 = sand.u32 1, %s906_s23  }
  0x26   : > { %s230_s15 = scalar_lea.sflag [#allocation3], %s229_s17  ;;  %s260_s20 = sshll.u32 %s258_s2, 4  ;;  %s261_s20 = int_to_ptr.hbm [resolvable:$true] %s260_s20 }
  0x27   : > { %626 = dma.hbm_to_vmem [thread:$0]  (!%p624_p8), %s241_s8, 128, %s243_s7, %s230_s15  }
  0x28   : > { %s253_s22 = scalar_lea.vmem [#allocation5], %s588_s25  ;;  %s250_s27 = scalar_lea.sflag [#allocation6], %s249_s9 }
  0x29   : > { %s262_s16 = sshll.u32 %s253_s22, 4  ;;  %271 = sbr.rel (%p980_p3) target bundleno = 203 (0xcb), region = 36  ;;  %s263_s16 = int_to_ptr.vmem [resolvable:$true] %s262_s16 }
  0x2a   : > { %629 = dma.hbm_to_vmem [thread:$0]  (!%p624_p8), %s261_s20, 128, %s263_s16, %s250_s27  }
  0x2b   : > { %s1038_s11 = sand.u32 (!%p980_p3), 1, %s890_s19  }
  0x2c   : > { %s1041_s26 = sshll.u32 (!%p980_p3), %s1038_s11, 3  ;;  %s274_s15 = scalar_lea.sflag (!%p980_p3), [#allocation3], %s1038_s11 }
  0x2d   : > { %s277_s2 = scalar_lea.vmem (!%p980_p3), [#allocation2], %s1041_s26 }
  0x2e   : > { %865 = dma.done.wait (%p1005_p12), %s274_s15, 128  }
  0x2f   : > { %867 = vsyncadd (%p1005_p12), %s274_s15, 4294967168  ;;  %s283_s20 = sand.u32 1, %s972_s24   ;;  %s287_s28 = scalar_lea.vmem [#allocation5], %s1041_s26 }
  0x30   : > { %s284_s22 = scalar_lea.sflag [#allocation6], %s283_s20 }
  0x31   : > { %869 = dma.done.wait (%p1005_p12), %s284_s22, 128  }
  0x32   : > { %871 = vsyncadd (%p1005_p12), %s284_s22, 4294967168 }
  0x33   : > { %873 = dma.done.wait (%p63_p1), [#allocation6], 1024  }
  0x34   : > { %875 = vsyncadd (%p63_p1), [#allocation6], 4294966272  ;;  %v334_v0 = vld [vmem:[#allocation7 + $0x18] sm:$0xff]  ;;  %v333_v2 = vld [vmem:[#allocation7 + $0x10] sm:$0xff]  ;;  %vm339_vm0 = vcmask 261120   ;;  %s603_s24 = sshll.u32 %s898_s21, 3 }
  0x35   : > { %v368_v1 = vld [vmem:[#allocation7 + $0x38] sm:$0xff]  ;;  %355 = vmatpush.msra.mxu0 %v334_v0  ;;  %v367_v3 = vld [vmem:[#allocation7 + $0x30] sm:$0xff]  ;;  %v332_v4 = vld [vmem:[#allocation7 + $0x8] sm:$0xff]  ;;  %s416_s16 = scalar_lea.hbm %s1139_s4, %s603_s24  ;;  %s431_s29 = scalar_lea.hbm %s1140_s5, %s603_s24 }
  0x36   : > { %389 = vmatpush.msra.mxu1 %v368_v1  ;;  %v366_v5 = vld [vmem:[#allocation7 + $0x28] sm:$0xff]  ;;  %v331_v6 = vld [vmem:[#allocation7] sm:$0xff]  ;;  %v363_v9 = vld [vmem:[%s287_s28] sm:$0xff]  ;;  %s322_s10 = scalar_lea.vmem [#allocation8], %s1041_s26  ;;  %s420_s21 = sshll.u32 %s416_s16, 4  ;;  %s421_s21 = int_to_ptr.hbm [resolvable:$true] %s420_s21 }
  0x37   : > { %356 = vmatpush.msra.mxu0 %v333_v2  ;;  %v365_v7 = vld [vmem:[#allocation7 + $0x20] sm:$0xff]  ;;  %s1075_s13 = sshll.u32 %s322_s10, 4  ;;  %s329_s27 = scalar_lea.vmem [#allocation9], %s1041_s26  ;;  %s419_s13 = int_to_ptr.vmem [resolvable:$true] %s1075_s13 }
  0x38   : > { %390 = vmatpush.msra.mxu1 %v367_v3  ;;  %v330_v8 = vld [vmem:[%s277_s2] sm:$0xff]  ;;  %s1078_s15 = sshll.u32 %s329_s27, 4  ;;  %s435_s2 = sshll.u32 %s431_s29, 4  ;;  %s434_s15 = int_to_ptr.vmem [resolvable:$true] %s1078_s15  ;;  %s1082_s2 = int_to_ptr.hbm [resolvable:$true] %s435_s2 }
  0x39   : > { %357 = vmatpush.msra.mxu0 %v332_v4  ;;  %v692_v10 = vld [vmem:[%s1138_s3] ss:$0 sm:$0xff]  ;;  %v693_v11 = vld [vmem:[%s1138_s3 + $0x1] ss:$0 sm:$0xff]  ;;  %s400_s20 = scalar_lea.sflag [#allocation4], %s1038_s11  ;;  %s798_s22 = sshra.s32 %s421_s21, 4  ;;  %s799_s22 = int_to_ptr.hbm [resolvable:$true] %s798_s22 }
  0x3a   : > { %391 = vmatpush.msra.mxu1 %v366_v5  ;;  %s800_s26 = scalar_lea.hbm %s799_s22, 8  ;;  %s804_s9 = scalar_lea.hbm %s1139_s4, 16 }
  0x3b   : > { %358 = vmatpush.msra.mxu0 %v331_v6  ;;  %p801_p1 = scmp.ne.s32.totalorder %s799_s22, %s800_s26  ;;  %p805_p10 = scmp.lt.s32.totalorder %s799_s22, %s1139_s4 }
  0x3c   : > { %392 = vmatpush.msra.mxu1 %v365_v7  ;;  %598 = vmatmul.msk.f32.vlgmr.msra.gmra.mxu0 %vm339_vm0, %v330_v8  ;;  %p806_p11 = scmp.lt.s32.totalorder %s804_s9, %s800_s26 }
  0x3d   : > { %600 = vmatmul.msk.f32.vlgmr.msra.gmra.mxu1 %vm339_vm0, %v363_v9  ;;  %p802_p3 = pnand %p801_p1, %p1012_p4 }
  0x3e   : > { %p807_p12 = por %p806_p11, %p805_p10 }
  0x3f   : > { %p803_p9 = pneg %p802_p3 }
  0x41   : > { %p808_p13 = pnand %p807_p12, %p803_p9 }
  0xb9   : > { %v360_v12 = vpop.f32.mrf.mxu0 }
  0xba   : > { %v394_v13 = vpop.f32.mrf.mxu1  ;;  %v361_v14 = vadd.f32 %v692_v10, %v360_v12 }
  0xbb   : > { %v395_v15 = vadd.f32 %v693_v11, %v394_v13 }
  0xbc   : > { %397 = vst.msk [vmem:[%s322_s10] sm:$0xff] %vm339_vm0, %v361_v14 }
  0xbd   : > { %811 = shalt.err (!%p808_p13)
}
  0xbe   : > { %615 = dma.vmem_to_hbm [thread:$0]  (%p1012_p4), %s419_s13, 128, %s421_s21, %s400_s20   ;;  %398 = vst.msk [vmem:[%s329_s27] sm:$0xff] %vm339_vm0, %v395_v15 }
  0xbf   : > { %s405_s17 = scalar_lea.sflag [#allocation10], %s1038_s11  ;;  %s826_s25 = sshra.s32 %s1082_s2, 4  ;;  %s827_s25 = int_to_ptr.hbm [resolvable:$true] %s826_s25 }
  0xc0   : > { %s828_s29 = scalar_lea.hbm %s827_s25, 8  ;;  %s832_s7 = scalar_lea.hbm %s1140_s5, 16 }
  0xc1   : > { %p829_p0 = scmp.ne.s32.totalorder %s827_s25, %s828_s29  ;;  %p833_p8 = scmp.lt.s32.totalorder %s827_s25, %s1140_s5 }
  0xc2   : > { %p834_p1 = scmp.lt.s32.totalorder %s832_s7, %s828_s29 }
  0xc3   : > { %p830_p2 = pnand %p829_p0, %p1012_p4 }
  0xc4   : > { %p835_p3 = por %p834_p1, %p833_p8 }
  0xc5   : > { %p831_p5 = pneg %p830_p2 }
  0xc7   : > { %p836_p9 = pnand %p835_p3, %p831_p5 }
  0xc9   : > { %839 = shalt.err (!%p836_p9)
}
  0xca   : > { %616 = dma.vmem_to_hbm [thread:$0]  (%p1012_p4), %s434_s15, 128, %s1082_s2, %s405_s17  }
  0xcb PF: > { %s447_s13 = sand.u32 1, %s886_s18   ;;  %p631_p10 = pnand %p587_p6, %p1020_p7 }
  0xcc   : > { %s448_s21 = scalar_lea.sflag [#allocation4], %s447_s13 }
  0xcd   : > { %p632_p11 = pneg %p631_p10 }
  0xcf   : > { %877 = dma.done.wait (%p632_p11), %s448_s21, 128  }
  0xd0   : > { %879 = vsyncadd (%p632_p11), %s448_s21, 4294967168  ;;  %s458_s27 = scalar_lea.sflag [#allocation10], %s447_s13 }
  0xd1   : > { %881 = dma.done.wait (%p632_p11), %s458_s27, 128  }
  0xd2   : > { %883 = vsyncadd (%p632_p11), %s458_s27, 4294967168  ;;  %s28_s23 = sadd.s32 1, %s906_s23   ;;  %s1158_s14 = sld [smem:[#allocation16_spill]] }
  0xd3   : > { %p25_p12 = scmp.ge.s32.totalorder %s28_s23, 4   ;;  %s1159_s20 = sld [smem:[#allocation19_spill]] }
  0xd4   : > { %s1160_s21 = sld [smem:[#allocation17_spill]]  ;;  %s1162_s18 = smov %s890_s19 }
  0xd5   : > { %s1161_s22 = sld [smem:[#allocation18_spill]]  ;;  %27 = sbr.rel (!%p25_p12) target bundleno = 12 (0xc), region = 117 }
  0xd8   : > { %s1163_s19 = smov %s1158_s14 }
  0xda   :  { %464 = vsyncpa [#allocation3], 1 }
  0xdb   :  { %466 = vsyncpa [#allocation3 + $0x1], 1 }
  0xdc   :  { %467 = vsyncpa [#allocation6], 1 }
  0xdd   :  { %469 = vsyncpa [#allocation6 + $0x1], 1 }
  0xde   :  { %470 = vsyncpa [#allocation4], 1 }
  0xdf   :  { %472 = vsyncpa [#allocation4 + $0x1], 1 }
  0xe0   :  { %473 = vsyncpa [#allocation10], 1 }
  0xe1   :  { %475 = vsyncpa [#allocation10 + $0x1], 1 }

</bundles_post_ra>
